<compile_context>
chip_gen: v7x
topology: tpu7x:2x2x1
jax: 0.10.0
libtpu: 0.0.40
codegen_flags: <defaults>
</compile_context>

<pallas_src>
import functools

import jax
import jax.numpy as jnp
from jax.experimental import pallas as pl
from jax.experimental.pallas import tpu as pltpu


def _round_up(x: int, m: int) -> int:
    return ((x + m - 1) // m) * m


def _cdiv(a: int, b: int) -> int:
    return -(-a // b)


def _choose_row_tile(n_rows: int, row_tile: int):
    """Pick a lane tile (multiple of 128) that balances padding and keeps
    >=2 grid steps when there is enough work (v7x has 2 TensorCores)."""
    lane = 128
    n_min = _round_up(max(n_rows, 1), lane)
    blocks = _cdiv(n_min, max(int(row_tile), lane))
    if n_min >= 4 * lane:          # enough rows: let both v7x TCs get a block
        blocks = max(blocks, 2)
    tr = _round_up(_cdiv(n_min, blocks), lane)
    n_blocks = _cdiv(n_min, tr)
    return tr, tr * n_blocks


def _mech_trig_ss_kernel(xu_ref,
                         w1c_ref, w1s_ref, w1vu_ref, b1_ref,
                         w2_ref, b2_ref, w3_ref, b3_ref, w4_ref, b4_ref,
                         out_ref, *, ts, nd8, vu8):
    """Lane-dense body.

    xu_ref : (nd8 + vu8, TR)  rows [0:n_dof]=q (rest of first nd8 rows zero),
                              rows [nd8:nd8+2*n_dof]=v,u (rest zero).
    out_ref: (2*nd8, TR)      rows [0:nd8]=ts*v (padded), rows [nd8:2*nd8]=dv (padded).
    Weights are pre-transposed to (out_features, in_features) with zero-padded
    columns/rows so every slice and matmul is sublane-tile aligned.
    """
    f32 = jnp.float32
    xu = xu_ref[...].astype(f32)               # single up-cast per block
    q8 = xu[0:nd8, :]                          # (8, TR)  q + zero rows
    vu = xu[nd8:nd8 + vu8, :]                  # (16, TR) [v; u] + zero rows

    # dq = ts * v  (rows beyond n_dof are junk; wrapper discards them)
    out_ref[0:nd8, :] = (ts * vu[0:nd8, :]).astype(out_ref.dtype)

    # Layer 1: W1^T @ [cos(q); sin(q); v; u] without any lane/sublane concat.
    # Padding rows contribute nothing: cos(0)/sin(0) hit zero weight columns.
    h = (jnp.dot(w1c_ref[...], jnp.cos(q8), preferred_element_type=f32)
         + jnp.dot(w1s_ref[...], jnp.sin(q8), preferred_element_type=f32)
         + jnp.dot(w1vu_ref[...], vu, preferred_element_type=f32)
         + b1_ref[...])
    h = jnp.tanh(h)                                                     # (h1, TR)
    h = jnp.tanh(jnp.dot(w2_ref[...], h, preferred_element_type=f32) + b2_ref[...])
    h = jnp.tanh(jnp.dot(w3_ref[...], h, preferred_element_type=f32) + b3_ref[...])
    dv8 = jnp.dot(w4_ref[...], h, preferred_element_type=f32) + b4_ref[...]  # (nd8, TR)
    out_ref[nd8:2 * nd8, :] = dv8.astype(out_ref.dtype)


def mechanical_trig_ss_forward(x, u, params, *, ts=0.1, n_dof=6, row_tile=2048):
    """dx = MechanicalTrigStateSpaceSystemV3.forward(x, u).

    x: (..., 2*n_dof), u: (..., n_dof).  Returns (..., 2*n_dof).
    params = (w1, b1, w2, b2, w3, b3, w4, b4) with w_i in (in, out) layout.
    """
    w1, b1, w2, b2, w3, b3, w4, b4 = params
    lead = x.shape[:-1]
    nx = x.shape[-1]
    assert nx == 2 * n_dof, (nx, n_dof)
    assert u.shape[-1] == n_dof and u.shape[:-1] == lead, (x.shape, u.shape)
    assert w1.shape[0] == 4 * n_dof and w4.shape[1] == n_dof

    h1, h2, h3 = w1.shape[1], w2.shape[1], w3.shape[1]
    dt = x.dtype

    n_rows = 1
    for d in lead:
        n_rows *= d
    if n_rows == 0:
        return jnp.zeros(lead + (2 * n_dof,), dt)

    nd8 = _round_up(n_dof, 8)          # sublane-aligned q block
    vu8 = _round_up(2 * n_dof, 8)      # sublane-aligned [v; u] block

    x2d = x.reshape(n_rows, nx)
    u2d = u.reshape(n_rows, n_dof).astype(dt)

    # ---- build one lane-dense input slab: rows = features, lanes = rows ----
    zq = jnp.zeros((n_rows, nd8 - n_dof), dt)
    zvu = jnp.zeros((n_rows, vu8 - 2 * n_dof), dt)
    slab = jnp.concatenate([x2d[:, :n_dof], zq, x2d[:, n_dof:], u2d, zvu], axis=-1)
    xuT = jnp.swapaxes(slab, 0, 1)                       # (nd8+vu8, n_rows)

    tr, n_pad = _choose_row_tile(n_rows, row_tile)
    if n_pad != n_rows:
        xuT = jnp.pad(xuT, ((0, 0), (0, n_pad - n_rows)))

    # ---- pre-transposed, zero-padded weights / column biases ----
    def _pad_cols(w, total):
        return jnp.pad(w, ((0, 0), (0, total - w.shape[1])))

    w1cT = _pad_cols(jnp.swapaxes(w1[0 * n_dof:1 * n_dof], 0, 1), nd8)     # (h1, nd8)
    w1sT = _pad_cols(jnp.swapaxes(w1[1 * n_dof:2 * n_dof], 0, 1), nd8)     # (h1, nd8)
    w1vuT = _pad_cols(jnp.swapaxes(w1[2 * n_dof:4 * n_dof], 0, 1), vu8)    # (h1, vu8)
    w2T = jnp.swapaxes(w2, 0, 1)                                           # (h2, h1)
    w3T = jnp.swapaxes(w3, 0, 1)                                           # (h3, h2)
    w4Tp = jnp.pad(jnp.swapaxes(w4, 0, 1), ((0, nd8 - n_dof), (0, 0)))     # (nd8, h3)
    b1c = b1.reshape(h1, 1)
    b2c = b2.reshape(h2, 1)
    b3c = b3.reshape(h3, 1)
    b4c = jnp.pad(b4.reshape(n_dof, 1), ((0, nd8 - n_dof), (0, 0)))        # (nd8, 1)

    grid = (n_pad // tr,)

    def col_spec(feat):
        return pl.BlockSpec((feat, tr), lambda i: (0, i))

    def full_spec(arr):
        return pl.BlockSpec(arr.shape, lambda i: (0, 0))

    # ---- cost estimate (tiny, launch/HBM-sensitive kernel) ----
    flops = 2 * n_pad * (4 * n_dof * h1 + h1 * h2 + h2 * h3 + h3 * n_dof)
    transcendentals = n_pad * (2 * n_dof + h1 + h2 + h3)
    weight_elems = sum(int(a.size) for a in (w1, b1, w2, b2, w3, b3, w4, b4))
    bytes_accessed = int(dt.itemsize) * n_pad * (nd8 + vu8 + 2 * nd8) + 4 * weight_elems

    kernel = functools.partial(_mech_trig_ss_kernel, ts=float(ts),
                               nd8=int(nd8), vu8=int(vu8))

    outT = pl.pallas_call(
        kernel,
        out_shape=jax.ShapeDtypeStruct((2 * nd8, n_pad), dt),
        grid=grid,
        in_specs=[
            col_spec(nd8 + vu8),                     # fused [q; v; u] slab
            full_spec(w1cT), full_spec(w1sT), full_spec(w1vuT), full_spec(b1c),
            full_spec(w2T), full_spec(b2c),
            full_spec(w3T), full_spec(b3c),
            full_spec(w4Tp), full_spec(b4c),
        ],
        out_specs=col_spec(2 * nd8),
        compiler_params=pltpu.CompilerParams(
            dimension_semantics=("parallel",),
        ),
        cost_estimate=pl.CostEstimate(
            flops=int(flops),
            transcendentals=int(transcendentals),
            bytes_accessed=int(bytes_accessed),
        ),
    )(xuT, w1cT, w1sT, w1vuT, b1c, w2T, b2c, w3T, b3c, w4Tp, b4c)

    # Layout plumbing back to (..., 2*n_dof): drop pad rows/lanes, un-transpose.
    dqT = outT[0:n_dof, :n_rows]
    dvT = outT[nd8:nd8 + n_dof, :n_rows]
    dx2d = jnp.swapaxes(jnp.concatenate([dqT, dvT], axis=0), 0, 1)
    return dx2d.reshape(*lead, 2 * n_dof)


# ----------------------------- reference & test -----------------------------

def init_params(key, n_dof=6, std=0.1, dtype=jnp.float32):
    """Weights in (in, out) layout; std chosen > init_small for a meaningful check."""
    h1, h2, h3 = 50, 50, 25
    d_in = 4 * n_dof
    ks = jax.random.split(key, 8)
    w1 = std * jax.random.normal(ks[0], (d_in, h1), dtype)
    b1 = std * jax.random.normal(ks[1], (h1,), dtype)
    w2 = std * jax.random.normal(ks[2], (h1, h2), dtype)
    b2 = std * jax.random.normal(ks[3], (h2,), dtype)
    w3 = std * jax.random.normal(ks[4], (h2, h3), dtype)
    b3 = std * jax.random.normal(ks[5], (h3,), dtype)
    w4 = std * jax.random.normal(ks[6], (h3, n_dof), dtype)
    b4 = std * jax.random.normal(ks[7], (n_dof,), dtype)
    return (w1, b1, w2, b2, w3, b3, w4, b4)


def ref_forward(x, u, params, ts, n_dof):
    """Pure-JAX transcription of the PyTorch forward."""
    w1, b1, w2, b2, w3, b3, w4, b4 = params
    q = x[..., :n_dof]
    v = x[..., n_dof:]
    dq = ts * v
    xu = jnp.concatenate([jnp.cos(q), jnp.sin(q), v, u], axis=-1)
    h = jnp.tanh(xu @ w1 + b1)
    h = jnp.tanh(h @ w2 + b2)
    h = jnp.tanh(h @ w3 + b3)
    dv = h @ w4 + b4
    return jnp.concatenate([dq, dv], axis=-1)


if __name__ == "__main__":
    key = jax.random.PRNGKey(0)
    n_dof = 6
    ts = 0.1

    k_x, k_u, k_p, k_x2, k_u2 = jax.random.split(key, 5)
    params = init_params(k_p, n_dof=n_dof, std=0.1)

    # Primary small shape: batch=2, seq=8, state dim 2*n_dof=12, input dim 6.
    B, T = 2, 8
    xa = jax.random.normal(k_x, (B, T, 2 * n_dof), dtype=jnp.float32)
    ua = jax.random.normal(k_u, (B, T, n_dof), dtype=jnp.float32)
    dxa = jax.block_until_ready(
        mechanical_trig_ss_forward(xa, ua, params, ts=ts, n_dof=n_dof))
    refa = ref_forward(xa, ua, params, ts, n_dof)
    assert dxa.shape == (B, T, 2 * n_dof), dxa.shape
    err_a = float(jnp.max(jnp.abs(dxa - refa)))
    assert jnp.allclose(dxa, refa, atol=1e-4, rtol=1e-4), f"max abs err {err_a}"

    # Second check: exercises a multi-block grid (2 blocks) and row padding.
    B2, T2 = 4, 200
    xb = jax.random.normal(k_x2, (B2, T2, 2 * n_dof), dtype=jnp.float32)
    ub = jax.random.normal(k_u2, (B2, T2, n_dof), dtype=jnp.float32)
    dxb = jax.block_until_ready(
        mechanical_trig_ss_forward(xb, ub, params, ts=ts, n_dof=n_dof))
    refb = ref_forward(xb, ub, params, ts, n_dof)
    assert dxb.shape == (B2, T2, 2 * n_dof), dxb.shape
    err_b = float(jnp.max(jnp.abs(dxb - refb)))
    assert jnp.allclose(dxb, refb, atol=1e-4, rtol=1e-4), f"max abs err {err_b}"

    print("KERNEL_OK")
</pallas_src>

<mosaic_0001>
module attributes {stable_mosaic.version = 11 : i64} {
  func.func @_mech_trig_ss_kernel(%arg0: i32, %arg1: memref<24x128xf32, #tpu.memory_space<vmem>>, %arg2: memref<50x8xf32, #tpu.memory_space<vmem>>, %arg3: memref<50x8xf32, #tpu.memory_space<vmem>>, %arg4: memref<50x16xf32, #tpu.memory_space<vmem>>, %arg5: memref<50x1xf32, #tpu.memory_space<vmem>>, %arg6: memref<50x50xf32, #tpu.memory_space<vmem>>, %arg7: memref<50x1xf32, #tpu.memory_space<vmem>>, %arg8: memref<25x50xf32, #tpu.memory_space<vmem>>, %arg9: memref<25x1xf32, #tpu.memory_space<vmem>>, %arg10: memref<8x25xf32, #tpu.memory_space<vmem>>, %arg11: memref<8x1xf32, #tpu.memory_space<vmem>>, %arg12: memref<16x128xf32, #tpu.memory_space<vmem>>) attributes {dimension_semantics = [#tpu.dimension_semantics<parallel>], iteration_bounds = array<i64: 1>, scalar_prefetch = 0 : i64, scratch_operands = 0 : i64, tpu.core_type = #tpu.core_type<tc>, window_params = [{transform_indices = @transform_0, window_bounds = array<i64: 24, 128>}, {pipeline_mode = #tpu.pipeline_mode<synchronous>, transform_indices = @transform_1, window_bounds = array<i64: 50, 8>}, {pipeline_mode = #tpu.pipeline_mode<synchronous>, transform_indices = @transform_2, window_bounds = array<i64: 50, 8>}, {pipeline_mode = #tpu.pipeline_mode<synchronous>, transform_indices = @transform_3, window_bounds = array<i64: 50, 16>}, {pipeline_mode = #tpu.pipeline_mode<synchronous>, transform_indices = @transform_4, window_bounds = array<i64: 50, 1>}, {pipeline_mode = #tpu.pipeline_mode<synchronous>, transform_indices = @transform_5, window_bounds = array<i64: 50, 50>}, {pipeline_mode = #tpu.pipeline_mode<synchronous>, transform_indices = @transform_6, window_bounds = array<i64: 50, 1>}, {pipeline_mode = #tpu.pipeline_mode<synchronous>, transform_indices = @transform_7, window_bounds = array<i64: 25, 50>}, {pipeline_mode = #tpu.pipeline_mode<synchronous>, transform_indices = @transform_8, window_bounds = array<i64: 25, 1>}, {pipeline_mode = #tpu.pipeline_mode<synchronous>, transform_indices = @transform_9, window_bounds = array<i64: 8, 25>}, {pipeline_mode = #tpu.pipeline_mode<synchronous>, transform_indices = @transform_10, window_bounds = array<i64: 8, 1>}, {transform_indices = @transform_11, window_bounds = array<i64: 16, 128>}]} {
    %c0 = arith.constant 0 : index
    %c0_0 = arith.constant 0 : index
    %0 = vector.load %arg1[%c0, %c0_0] : memref<24x128xf32, #tpu.memory_space<vmem>>, vector<24x128xf32>
    %1 = vector.extract_strided_slice %0 {offsets = [0, 0], sizes = [8, 128], strides = [1, 1]} : vector<24x128xf32> to vector<8x128xf32>
    %2 = vector.extract_strided_slice %0 {offsets = [8, 0], sizes = [16, 128], strides = [1, 1]} : vector<24x128xf32> to vector<16x128xf32>
    %3 = vector.extract_strided_slice %2 {offsets = [0, 0], sizes = [8, 128], strides = [1, 1]} : vector<16x128xf32> to vector<8x128xf32>
    %cst = arith.constant 1.000000e-01 : f32
    %4 = vector.broadcast %cst : f32 to vector<8x128xf32>
    %5 = arith.mulf %4, %3 : vector<8x128xf32>
    %c0_1 = arith.constant 0 : index
    %c0_2 = arith.constant 0 : index
    %6 = vector.load %arg12[%c0_1, %c0_2] : memref<16x128xf32, #tpu.memory_space<vmem>>, vector<8x128xf32>
    tpu.vector_store %arg12[%c0_1, %c0_2], %5 {strides = array<i32>} : memref<16x128xf32, #tpu.memory_space<vmem>>, vector<8x128xf32>,
    %c0_3 = arith.constant 0 : index
    %c0_4 = arith.constant 0 : index
    %7 = vector.load %arg2[%c0_3, %c0_4] : memref<50x8xf32, #tpu.memory_space<vmem>>, vector<50x8xf32>
    %8 = math.cos %1 : vector<8x128xf32>
    %cst_5 = arith.constant dense<0.000000e+00> : vector<50x128xf32>
    %9 = tpu.matmul %7, %8, %cst_5 {dimension_numbers = #tpu.dot_dimension_numbers<[1], [0], [0], [1], [0, 0, 1, 1], [], []>} : vector<50x8xf32>, vector<8x128xf32>, vector<50x128xf32> -> vector<50x128xf32>
    %c0_6 = arith.constant 0 : index
    %c0_7 = arith.constant 0 : index
    %10 = vector.load %arg3[%c0_6, %c0_7] : memref<50x8xf32, #tpu.memory_space<vmem>>, vector<50x8xf32>
    %11 = math.sin %1 : vector<8x128xf32>
    %cst_8 = arith.constant dense<0.000000e+00> : vector<50x128xf32>
    %12 = tpu.matmul %10, %11, %cst_8 {dimension_numbers = #tpu.dot_dimension_numbers<[1], [0], [0], [1], [0, 0, 1, 1], [], []>} : vector<50x8xf32>, vector<8x128xf32>, vector<50x128xf32> -> vector<50x128xf32>
    %13 = arith.addf %9, %12 : vector<50x128xf32>
    %c0_9 = arith.constant 0 : index
    %c0_10 = arith.constant 0 : index
    %14 = vector.load %arg4[%c0_9, %c0_10] : memref<50x16xf32, #tpu.memory_space<vmem>>, vector<50x16xf32>
    %cst_11 = arith.constant dense<0.000000e+00> : vector<50x128xf32>
    %15 = tpu.matmul %14, %2, %cst_11 {dimension_numbers = #tpu.dot_dimension_numbers<[1], [0], [0], [1], [0, 0, 1, 1], [], []>} : vector<50x16xf32>, vector<16x128xf32>, vector<50x128xf32> -> vector<50x128xf32>
    %16 = arith.addf %13, %15 : vector<50x128xf32>
    %c0_12 = arith.constant 0 : index
    %c0_13 = arith.constant 0 : index
    %17 = vector.load %arg5[%c0_12, %c0_13] : memref<50x1xf32, #tpu.memory_space<vmem>>, vector<50x1xf32>
    %18 = vector.broadcast %17 : vector<50x1xf32> to vector<50x128xf32>
    %19 = arith.addf %16, %18 : vector<50x128xf32>
    %20 = math.tanh %19 : vector<50x128xf32>
    %c0_14 = arith.constant 0 : index
    %c0_15 = arith.constant 0 : index
    %21 = vector.load %arg6[%c0_14, %c0_15] : memref<50x50xf32, #tpu.memory_space<vmem>>, vector<50x50xf32>
    %cst_16 = arith.constant dense<0.000000e+00> : vector<50x128xf32>
    %22 = tpu.matmul %21, %20, %cst_16 {dimension_numbers = #tpu.dot_dimension_numbers<[1], [0], [0], [1], [0, 0, 1, 1], [], []>} : vector<50x50xf32>, vector<50x128xf32>, vector<50x128xf32> -> vector<50x128xf32>
    %c0_17 = arith.constant 0 : index
    %c0_18 = arith.constant 0 : index
    %23 = vector.load %arg7[%c0_17, %c0_18] : memref<50x1xf32, #tpu.memory_space<vmem>>, vector<50x1xf32>
    %24 = vector.broadcast %23 : vector<50x1xf32> to vector<50x128xf32>
    %25 = arith.addf %22, %24 : vector<50x128xf32>
    %26 = math.tanh %25 : vector<50x128xf32>
    %c0_19 = arith.constant 0 : index
    %c0_20 = arith.constant 0 : index
    %27 = vector.load %arg8[%c0_19, %c0_20] : memref<25x50xf32, #tpu.memory_space<vmem>>, vector<25x50xf32>
    %cst_21 = arith.constant dense<0.000000e+00> : vector<25x128xf32>
    %28 = tpu.matmul %27, %26, %cst_21 {dimension_numbers = #tpu.dot_dimension_numbers<[1], [0], [0], [1], [0, 0, 1, 1], [], []>} : vector<25x50xf32>, vector<50x128xf32>, vector<25x128xf32> -> vector<25x128xf32>
    %c0_22 = arith.constant 0 : index
    %c0_23 = arith.constant 0 : index
    %29 = vector.load %arg9[%c0_22, %c0_23] : memref<25x1xf32, #tpu.memory_space<vmem>>, vector<25x1xf32>
    %30 = vector.broadcast %29 : vector<25x1xf32> to vector<25x128xf32>
    %31 = arith.addf %28, %30 : vector<25x128xf32>
    %32 = math.tanh %31 : vector<25x128xf32>
    %c0_24 = arith.constant 0 : index
    %c0_25 = arith.constant 0 : index
    %33 = vector.load %arg10[%c0_24, %c0_25] : memref<8x25xf32, #tpu.memory_space<vmem>>, vector<8x25xf32>
    %cst_26 = arith.constant dense<0.000000e+00> : vector<8x128xf32>
    %34 = tpu.matmul %33, %32, %cst_26 {dimension_numbers = #tpu.dot_dimension_numbers<[1], [0], [0], [1], [0, 0, 1, 1], [], []>} : vector<8x25xf32>, vector<25x128xf32>, vector<8x128xf32> -> vector<8x128xf32>
    %c0_27 = arith.constant 0 : index
    %c0_28 = arith.constant 0 : index
    %35 = vector.load %arg11[%c0_27, %c0_28] : memref<8x1xf32, #tpu.memory_space<vmem>>, vector<8x1xf32>
    %36 = vector.broadcast %35 : vector<8x1xf32> to vector<8x128xf32>
    %37 = arith.addf %34, %36 : vector<8x128xf32>
    %c8 = arith.constant 8 : index
    %c0_29 = arith.constant 0 : index
    %38 = vector.load %arg12[%c8, %c0_29] : memref<16x128xf32, #tpu.memory_space<vmem>>, vector<8x128xf32>
    tpu.vector_store %arg12[%c8, %c0_29], %37 {strides = array<i32>} : memref<16x128xf32, #tpu.memory_space<vmem>>, vector<8x128xf32>,
    return
  }
  func.func @transform_0(%arg0: i32) -> (i32, i32) {
    %c0_i32 = arith.constant 0 : i32
    %c0_i32_0 = arith.constant 0 : i32
    return %c0_i32, %arg0 : i32, i32
  }
  func.func @transform_1(%arg0: i32) -> (i32, i32) {
    %c0_i32 = arith.constant 0 : i32
    %c0_i32_0 = arith.constant 0 : i32
    %c0_i32_1 = arith.constant 0 : i32
    return %c0_i32, %c0_i32_0 : i32, i32
  }
  func.func @transform_2(%arg0: i32) -> (i32, i32) {
    %c0_i32 = arith.constant 0 : i32
    %c0_i32_0 = arith.constant 0 : i32
    %c0_i32_1 = arith.constant 0 : i32
    return %c0_i32, %c0_i32_0 : i32, i32
  }
  func.func @transform_3(%arg0: i32) -> (i32, i32) {
    %c0_i32 = arith.constant 0 : i32
    %c0_i32_0 = arith.constant 0 : i32
    %c0_i32_1 = arith.constant 0 : i32
    return %c0_i32, %c0_i32_0 : i32, i32
  }
  func.func @transform_4(%arg0: i32) -> (i32, i32) {
    %c0_i32 = arith.constant 0 : i32
    %c0_i32_0 = arith.constant 0 : i32
    %c0_i32_1 = arith.constant 0 : i32
    return %c0_i32, %c0_i32_0 : i32, i32
  }
  func.func @transform_5(%arg0: i32) -> (i32, i32) {
    %c0_i32 = arith.constant 0 : i32
    %c0_i32_0 = arith.constant 0 : i32
    %c0_i32_1 = arith.constant 0 : i32
    return %c0_i32, %c0_i32_0 : i32, i32
  }
  func.func @transform_6(%arg0: i32) -> (i32, i32) {
    %c0_i32 = arith.constant 0 : i32
    %c0_i32_0 = arith.constant 0 : i32
    %c0_i32_1 = arith.constant 0 : i32
    return %c0_i32, %c0_i32_0 : i32, i32
  }
  func.func @transform_7(%arg0: i32) -> (i32, i32) {
    %c0_i32 = arith.constant 0 : i32
    %c0_i32_0 = arith.constant 0 : i32
    %c0_i32_1 = arith.constant 0 : i32
    return %c0_i32, %c0_i32_0 : i32, i32
  }
  func.func @transform_8(%arg0: i32) -> (i32, i32) {
    %c0_i32 = arith.constant 0 : i32
    %c0_i32_0 = arith.constant 0 : i32
    %c0_i32_1 = arith.constant 0 : i32
    return %c0_i32, %c0_i32_0 : i32, i32
  }
  func.func @transform_9(%arg0: i32) -> (i32, i32) {
    %c0_i32 = arith.constant 0 : i32
    %c0_i32_0 = arith.constant 0 : i32
    %c0_i32_1 = arith.constant 0 : i32
    return %c0_i32, %c0_i32_0 : i32, i32
  }
  func.func @transform_10(%arg0: i32) -> (i32, i32) {
    %c0_i32 = arith.constant 0 : i32
    %c0_i32_0 = arith.constant 0 : i32
    %c0_i32_1 = arith.constant 0 : i32
    return %c0_i32, %c0_i32_0 : i32, i32
  }
  func.func @transform_11(%arg0: i32) -> (i32, i32) {
    %c0_i32 = arith.constant 0 : i32
    %c0_i32_0 = arith.constant 0 : i32
    return %c0_i32, %arg0 : i32, i32
  }
}

</mosaic_0001>

<bundles_post_ra>
// kernel: tpu_custom_call.1
= control target key start
LH: loop header
LB: loop body
LE: loop exit
PB: predicated region body
PF: predicated region fallthrough
CT: control target
= control target key end

     0   :  { %v1467_v1 = vmov 0.0   ;;  %vm1468_vm0 = vmmov 0   ;;  %v1469_v8 = vmov 0   ;;  %v1470_v16 = vmov 683565275   ;;  %s1851_s0 = inlined_call_operand.vmem [shape: f32[24,128], index: 0, kind: input, shape index: {}]   ;;  %s1852_s1 = inlined_call_operand.vmem [shape: f32[50,8], index: 1, kind: input, shape index: {}]   ;;  %s1853_s2 = inlined_call_operand.vmem [shape: f32[50,8], index: 2, kind: input, shape index: {}]   ;;  %s1854_s3 = inlined_call_operand.vmem [shape: f32[50,16], index: 3, kind: input, shape index: {}]   ;;  %s1855_s4 = inlined_call_operand.vmem [shape: f32[50,1], index: 4, kind: input, shape index: {}]   ;;  %s1856_s5 = inlined_call_operand.vmem [shape: f32[50,50], index: 5, kind: input, shape index: {}]   ;;  %s1857_s6 = inlined_call_operand.vmem [shape: f32[50,1], index: 6, kind: input, shape index: {}]   ;;  %s1858_s7 = inlined_call_operand.vmem [shape: f32[25,50], index: 7, kind: input, shape index: {}]   ;;  %s1859_s8 = inlined_call_operand.vmem [shape: f32[25,1], index: 8, kind: input, shape index: {}]   ;;  %s1860_s9 = inlined_call_operand.vmem [shape: f32[8,25], index: 9, kind: input, shape index: {}]   ;;  %s1861_s10 = inlined_call_operand.vmem [shape: f32[8,1], index: 10, kind: input, shape index: {}]   ;;  %s1862_s11 = inlined_call_operand.hbm [shape: f32[16,128], index: 11, kind: output, shape index: {}]  }
   0x1   :  { %v1544_v0 = vld [vmem:[%s1851_s0] sm:$0xff]  ;;  %1215 = vmatprep.subr.mxu0 %v1467_v1  ;;  %1238 = vmatprep.subr.mxu1 %v1467_v1  ;;  %v646_v14 = vld [vmem:[%s1855_s4 + $0x10] sm:$0xff]  ;;  %v1471_v18 = vmov 2475754826   ;;  %v1472_v20 = vmov 2131351028  }
   0x2   :  { %v54_v2 = vand.u32 2139095040, %v1544_v0  ;;  %v51_v4 = vand.u32 2147483647, %v1544_v0  ;;  %1217 = vmatprep.mubr.msk.f32.mxu0 %vm1468_vm0, %v1467_v1  ;;  %1240 = vmatprep.mubr.msk.f32.mxu1 %vm1468_vm0, %v1467_v1  ;;  %v644_v11 = vld [vmem:[%s1855_s4] sm:$0xff]  ;;  %v645_v22 = vld [vmem:[%s1855_s4 + $0x8] sm:$0xff]  ;;  %v647_v27 = vld [vmem:[%s1855_s4 + $0x18] sm:$0xff] }
   0x3   :  { %1401 = vset.pattern.permute.xlu0 %v1469_v8  ;;  %1402 = vset.pattern.permute.xlu1 %v1469_v8  ;;  %v1473_v23 = vmov 2102212464   ;;  %v1474_v25 = vmov 920167782   ;;  %v1475_v33 = vmov 1326507024  }
   0x4   :  { %v55_v3 = vshrl.u32 %v54_v2, 23  ;;  %v58_v7 = vand.u32 8388607, %v51_v4  ;;  %653 = vperm.xlu0 %1401, %v644_v11   ;;  %663 = vperm.xlu1 %1402, %v646_v14   ;;  %v648_v39 = vld [vmem:[%s1855_s4 + $0x20] sm:$0xff]  ;;  %v649_v42 = vld [vmem:[%s1855_s4 + $0x28] sm:$0xff] }
   0x6   :  { %v1116_v5 = vadd.s32 4294967169, %v55_v3  ;;  %v59_v12 = vor.u32 8388608, %v58_v7 }
   0x8   :  { %v61_v6 = vadd.s32 1, %v1116_v5  ;;  %v99_v35 = vshll.u32 %v59_v12, 8  ;;  %658 = vperm.xlu0 %1401, %v645_v22   ;;  %668 = vperm.xlu1 %1402, %v647_v27  }
   0xa   :  { %vm62_vm1 = vcmp.gt.s32.totalorder %v61_v6, 0 }
   0xb   :  { %v63_v9 = vsel %vm62_vm1, %v61_v6, 0 }
   0xc   :  { %v65_v10 = vand.u32 31, %v63_v9  ;;  %v64_v13 = vshrl.u32 %v63_v9, 5 }
   0xe   :  { %v66_v15 = vsub.s32 32, %v65_v10  ;;  %v68_v17 = vshll.u32 %v1470_v16, %v65_v10  ;;  %v71_v19 = vshll.u32 %v1471_v18, %v65_v10  ;;  %v74_v21 = vshll.u32 %v1472_v20, %v65_v10 }
   0xf   :  { %v77_v24 = vshll.u32 %v1473_v23, %v65_v10  ;;  %v80_v26 = vshll.u32 %v1474_v25, %v65_v10  ;;  %vm83_vm2 = vcmp.lt.s32.totalorder %v64_v13, 1  ;;  %vm86_vm3 = vcmp.lt.s32.totalorder %v64_v13, 4 }
  0x10   :  { %v67_v28 = vshrl.u32 %v1470_v16, %v66_v15  ;;  %v69_v29 = vshrl.u32 %v1471_v18, %v66_v15  ;;  %v72_v30 = vshrl.u32 %v1472_v20, %v66_v15  ;;  %v75_v31 = vshrl.u32 %v1473_v23, %v66_v15 }
  0x11   :  { %v78_v32 = vshrl.u32 %v1474_v25, %v66_v15  ;;  %v81_v34 = vshrl.u32 %v1475_v33, %v66_v15  ;;  %vm84_vm4 = vcmp.lt.s32.totalorder %v64_v13, 2  ;;  %vm85_vm5 = vcmp.lt.s32.totalorder %v64_v13, 3 }
  0x12   :  { %v70_v36 = vor.u32 %v69_v29, %v68_v17  ;;  %v73_v37 = vor.u32 %v72_v30, %v71_v19  ;;  %v76_v38 = vor.u32 %v75_v31, %v74_v21 }
  0x13   :  { %v79_v40 = vor.u32 %v78_v32, %v77_v24  ;;  %v82_v41 = vor.u32 %v81_v34, %v80_v26 }
  0x14   :  { %16 = vsyncpa [#allocation3], 0  ;;  %v87_v43 = vsel %vm83_vm2, %v67_v28, %v70_v36  ;;  %v88_v44 = vsel %vm86_vm3, %v76_v38, 2102212464  ;;  %v91_v45 = vsel %vm83_vm2, %v70_v36, %v73_v37  ;;  %v95_v46 = vsel %vm83_vm2, %v73_v37, %v76_v38  ;;  %673 = vperm.xlu0 %1401, %v648_v39   ;;  %v650_v52 = vld [vmem:[%s1855_s4 + $0x30] sm:$0x3]  ;;  %678 = vperm.xlu1 %1402, %v649_v42  }
  0x15   :  { %v89_v47 = vsel %vm85_vm5, %v73_v37, %v88_v44  ;;  %v92_v48 = vsel %vm86_vm3, %v79_v40, 920167782  ;;  %v96_v49 = vsel %vm86_vm3, %v82_v41, 1326507024  ;;  %v707_v56 = vld [vmem:[%s1857_s6] sm:$0xff]  ;;  %v708_v61 = vld [vmem:[%s1857_s6 + $0x8] sm:$0xff]  ;;  %vm143_vm1 = vweird.f32 %v1544_v0 }
  0x16   :  { %v93_v50 = vsel %vm85_vm5, %v76_v38, %v92_v48  ;;  %v97_v51 = vsel %vm85_vm5, %v79_v40, %v96_v49  ;;  %v90_v53 = vsel %vm84_vm4, %v87_v43, %v89_v47  ;;  %v709_v63 = vld [vmem:[%s1857_s6 + $0x10] sm:$0xff]  ;;  %v710_v5 = vld [vmem:[%s1857_s6 + $0x18] sm:$0xff]  ;;  %v711_v7 = vld [vmem:[%s1857_s6 + $0x20] sm:$0xff]  ;;  %vm53_vm8 = vcmp.lt.s32.totalorder %v1544_v0, 0  ;;  %s1478_s28 = smov [#allocation2]  }
  0x17   :  { %v94_v54 = vsel %vm84_vm4, %v91_v45, %v93_v50  ;;  %v98_v55 = vsel %vm84_vm4, %v95_v46, %v97_v51  ;;  %v106_v62 = vmul.u32 %v99_v35, %v90_v53  ;;  %v712_v9 = vld [vmem:[%s1857_s6 + $0x28] sm:$0xff]  ;;  %v713_v11 = vld [vmem:[%s1857_s6 + $0x30] sm:$0x3]  ;;  %v886_v13 = vld [vmem:[%s1859_s8] sm:$0xff]  ;;  %vm52_vm9 = vcmp.le.f32.partialorder %v51_v4, 0.7853982 }
  0x18   :  { %v1586_v57 = vmul.u32.u64.low %v99_v35, %v98_v55  ;;  %v1587_v58 = vmul.u32.u64.high %v99_v35, %v98_v55, %v1586_v57  ;;  %v1589_v59 = vmul.u32.u64.low %v99_v35, %v94_v54  ;;  %v1590_v60 = vmul.u32.u64.high %v99_v35, %v94_v54, %v1589_v59  ;;  %683 = vperm.xlu0 %1401, %v650_v52   ;;  %716 = vperm.xlu1 %1402, %v707_v56   ;;  %v887_v15 = vld [vmem:[%s1859_s8 + $0x8] sm:$0xff]  ;;  %v888_v17 = vld [vmem:[%s1859_s8 + $0x10] sm:$0xff]  ;;  %v889_v19 = vld [vmem:[%s1859_s8 + $0x18] sm:$0x1]  ;;  %s1105_s29 = sshll.u32 %s1478_s28, 4  ;;  %s1106_s29 = int_to_ptr.vmem [resolvable:$true] %s1105_s29 }
  0x19   :  { %v1015_v21 = vld [vmem:[%s1861_s10] sm:$0xff]  ;;  %v1637_v52 = vld [vmem:[%s1851_s0 + $0x8] sm:$0xff]  ;;  %v41_v53 = vld [vmem:[%s1851_s0 + $0x10] sm:$0xff]  ;;  %vm265_vm2 = vcmask 64512   ;;  %vm515_vm3 = vcmask 130048   ;;  %vm771_vm4 = vcmask 1041408   ;;  %p1448_p1 = scmp.lt.s32.totalorder %s1106_s29, %s1106_s29 }
  0x1a   :  { %vm108_vm6 = vc.u32 %v1587_v58, %v1589_v59  ;;  %v109_v2 = vadd.s32 1, %v1590_v60  ;;  %v107_v23 = vadd.s32 %v1589_v59, %v1587_v58  ;;  %v154_v56 = vld [vmem:[%s1853_s2] sm:$0xff]  ;;  %v1353_v59 = vpack.c.bf16 %v41_v53, %v1637_v52  ;;  %s1443_s30 = scalar_lea.vmem %s1106_s29, 256 }
  0x1b   :  { %vm749_vm5 = vcmask 408576   ;;  %p1444_p0 = scmp.ne.s32.totalorder %s1106_s29, %s1443_s30  ;;  %p1449_p2 = scmp.lt.s32.totalorder %s1443_s30, %s1443_s30 }
  0x1c   :  { %721 = vperm.xlu0 %1401, %v708_v61   ;;  %v110_v3 = vsel %vm108_vm6, %v109_v2, %v1590_v60  ;;  %726 = vperm.xlu1 %1402, %v709_v63   ;;  %v155_v60 = vld [vmem:[%s1853_s2 + $0x8] sm:$0xff]  ;;  %v156_v63 = vld [vmem:[%s1853_s2 + $0x10] sm:$0xff]  ;;  %vm1477_vm6 = vmmov 1  }
  0x1d   :  { %v111_v6 = vadd.s32 %v110_v3, %v106_v62  ;;  %v45_v61 = vld [vmem:[%s1852_s1 + $0x8] sm:$0xff]  ;;  %v1476_v62 = vmov 0.0|0.0   ;;  %v46_v2 = vld [vmem:[%s1852_s1 + $0x10] sm:$0xff]  ;;  %v157_v3 = vld [vmem:[%s1853_s2 + $0x18] sm:$0xff]  ;;  %p1450_p3 = por %p1449_p2, %p1448_p1 }
  0x1f   :  { %v112_v8 = vadd.s32 536870912, %v111_v6  ;;  %p1451_p4 = pnand %p1450_p3, %p1444_p0 }
  0x20   :  { %731 = vperm.xlu0 %1401, %v710_v5   ;;  %736 = vperm.xlu1 %1402, %v711_v7   ;;  %v47_v5 = vld [vmem:[%s1852_s1 + $0x18] sm:$0xff]  ;;  %v48_v7 = vld [vmem:[%s1852_s1 + $0x20] sm:$0xff] }
  0x21   :  { %v113_v10 = vshrl.u32 %v112_v8, 30  ;;  %v159_v8 = vld [vmem:[%s1853_s2 + $0x28] sm:$0xff] }
  0x23   :  { %v114_v12 = vshll.u32 %v113_v10, 30  ;;  %v137_v35 = vsub.s32 4, %v113_v10 }
  0x24   :  { %741 = vperm.xlu0 %1401, %v712_v9   ;;  %746 = vperm.xlu1 %1402, %v713_v11   ;;  %v49_v9 = vld [vmem:[%s1852_s1 + $0x28] sm:$0xff]  ;;  %v50_v11 = vld [vmem:[%s1852_s1 + $0x30] sm:$0x3] }
  0x25   :  { %v115_v14 = vsub.s32 %v111_v6, %v114_v12  ;;  %v138_v38 = vsel %vm53_vm8, %v137_v35, %v113_v10  ;;  %v158_v6 = vld [vmem:[%s1853_s2 + $0x20] sm:$0xff]  ;;  %v160_v10 = vld [vmem:[%s1853_s2 + $0x30] sm:$0x3] }
  0x26   :  { %v140_v41 = vsel %vm52_vm9, 0, %v138_v38  ;;  %v508_v12 = vld [vmem:[%s1854_s3] sm:$0xff] }
  0x27   :  { %v117_v16 = vsub.s32 0, %v115_v14  ;;  %v254_v42 = vadd.s32 3, %v140_v41  ;;  %v144_v44 = vand.u32 3, %v140_v41 }
  0x28   :  { %892 = vperm.xlu0 %1401, %v886_v13   ;;  %897 = vperm.xlu1 %1402, %v887_v15   ;;  %v509_v13 = vld [vmem:[%s1854_s3 + $0x8] sm:$0xff]  ;;  %v511_v15 = vld [vmem:[%s1854_s3 + $0x18] sm:$0xff] }
  0x29   :  { %v1117_v18 = vmin.u32 %v117_v16, %v115_v14  ;;  %v255_v43 = vand.u32 3, %v254_v42  ;;  %vm149_vm11 = vcmp.eq.s32.totalorder %v144_v44, 2  ;;  %vm146_vm13 = vcmp.eq.s32.totalorder %v144_v44, 0  ;;  %v512_v16 = vld [vmem:[%s1854_s3 + $0x20] sm:$0xff] }
  0x2a   :  { %vm145_vm15 = vcmp.lt.s32.totalorder %v144_v44, 2 }
  0x2b   :  { %v119_v20 = vclz %v1117_v18  ;;  %vm260_vm10 = vcmp.eq.s32.totalorder %v255_v43, 2  ;;  %vm257_vm12 = vcmp.eq.s32.totalorder %v255_v43, 0  ;;  %vm256_vm14 = vcmp.lt.s32.totalorder %v255_v43, 2  ;;  %v514_v18 = vld [vmem:[%s1854_s3 + $0x30] sm:$0x3] }
  0x2c   :  { %902 = vperm.xlu0 %1401, %v888_v17   ;;  %907 = vperm.xlu1 %1402, %v889_v19   ;;  %v513_v17 = vld [vmem:[%s1854_s3 + $0x28] sm:$0xff] }
  0x2d   :  { %v1118_v22 = vadd.s32 4294967294, %v119_v20 }
  0x2f   :  { %vm1119_vm7 = vcmp.lt.s32.totalorder %v1118_v22, 0 }
  0x30   :  { %1018 = vperm.xlu0 %1401, %v1015_v21   ;;  %v122_v24 = vsel %vm1119_vm7, 0, %v1118_v22 }
  0x31   :  { %v123_v25 = vsub.s32 32, %v122_v24  ;;  %v124_v26 = vshll.u32 %v115_v14, %v122_v24  ;;  %v127_v27 = vsub.s32 4294967266, %v122_v24  ;;  %v510_v14 = vld [vmem:[%s1854_s3 + $0x10] sm:$0xff] }
  0x33   :  { %v125_v28 = vshrl.u32 %v107_v23, %v123_v25  ;;  %v128_v29 = vadd.s32 127, %v127_v27 }
  0x35   :  { %v126_v30 = vor.u32 %v125_v28, %v124_v26  ;;  %v129_v31 = vshll.u32 %v128_v29, 23 }
  0x37   :  { %v130_v32 = vor.u32 4788187, %v129_v31  ;;  %v133_v33 = vcvt.s32.f32 %v126_v30 }
  0x39   :  { %v131_v34 = vand.u32 2147483647, %v130_v32 }
  0x3b   :  { %v134_v36 = vmul.f32 %v133_v33, %v131_v34 }
  0x3d   :  { %v135_v37 = vxor.u32 2147483648, %v134_v36 }
  0x3f   :  { %v136_v39 = vsel %vm53_vm8, %v135_v37, %v134_v36  ;;  %vm1021_vm8 = vcmask 203776  }
  0x40   :  { %v139_v40 = vsel %vm52_vm9, %v1544_v0, %v136_v39  ;;  %v44_v0 = vld [vmem:[%s1852_s1] sm:$0xff] }
  0x41   :  { %1403 = vcosq.f32 %v139_v40 }
  0x42   :  { %1405 = vsinq.f32 %v139_v40 }
  0x4b   :  { %v1404_v45 = vpop.eup %1403 }
  0x4c   :  { %v1406_v46 = vpop.eup %1405  ;;  %v150_v47 = vxor.u32 2147483648, %v1404_v45 }
  0x4d   :  { %v147_v48 = vxor.u32 2147483648, %v1406_v46 }
  0x4e   :  { %v262_v4 = vsel %vm260_vm10, %v150_v47, %v1406_v46  ;;  %v151_v49 = vsel %vm149_vm11, %v150_v47, %v1406_v46 }
  0x4f   :  { %v259_v50 = vsel %vm257_vm12, %v1404_v45, %v147_v48  ;;  %v148_v51 = vsel %vm146_vm13, %v1404_v45, %v147_v48 }
  0x50   :  { %v263_v54 = vsel %vm256_vm14, %v259_v50, %v262_v4  ;;  %v152_v55 = vsel %vm145_vm15, %v148_v51, %v151_v49 }
  0x51   :  { %v264_v57 = vsel %vm143_vm1, nan, %v263_v54  ;;  %v153_v58 = vsel %vm143_vm1, nan, %v152_v55 }
  0x52   :  { %1216 = vmatpush3.msra.mxu0 %v264_v57  ;;  %1239 = vmatpush3.msra.mxu1 %v153_v58 }
  0x53   :  { %1218 = vmatmul.mubr.msk.f32.vlgmr.msra.gmra.mrb[0].mxu0 %vm265_vm2, %v154_v56  ;;  %1241 = vmatmul.mubr.msk.f32.vlgmr.msra.gmra.mrb[0].mxu1 %vm265_vm2, %v44_v0 }
  0x54   :  { %1220 = vmatprep.mubr.msk.f32.mxu0 %vm1468_vm0, %v1467_v1  ;;  %1243 = vmatprep.mubr.msk.f32.mxu1 %vm1468_vm0, %v1467_v1 }
  0x55   :  { %1352 = vmatprep.subr.bf16.mxu0 %v1476_v62  ;;  %1355 = vmatprep.subr.bf16.mxu1 %v1476_v62 }
  0x56   :  { %1354 = vmatpush3.bf16.msra.mxu0 %v1353_v59 }
  0x57   :  { %1221 = vmatmul.mubr.msk.f32.gmra.mrb[2].mxu0 %vm265_vm2, %v155_v60  ;;  %1244 = vmatmul.mubr.msk.f32.gmra.mrb[2].mxu1 %vm265_vm2, %v45_v61 }
  0x58   :  { %1223 = vmatprep.mubr.msk.f32.mxu0 %vm1468_vm0, %v1467_v1  ;;  %1246 = vmatprep.mubr.msk.f32.mxu1 %vm1468_vm0, %v1467_v1 }
  0x5b   :  { %1224 = vmatmul.mubr.msk.f32.gmra.mrb[4].mxu0 %vm265_vm2, %v156_v63  ;;  %1247 = vmatmul.mubr.msk.f32.gmra.mrb[4].mxu1 %vm265_vm2, %v46_v2 }
  0x5c   :  { %1226 = vmatprep.mubr.msk.f32.mxu0 %vm1468_vm0, %v1467_v1  ;;  %1249 = vmatprep.mubr.msk.f32.mxu1 %vm1468_vm0, %v1467_v1 }
  0x5f   :  { %1227 = vmatmul.mubr.msk.f32.gmra.mrb[6].mxu0 %vm265_vm2, %v157_v3  ;;  %1250 = vmatmul.mubr.msk.f32.gmra.mrb[6].mxu1 %vm265_vm2, %v47_v5 }
  0x60   :  { %1229 = vmatprep.mubr.msk.f32.mxu0 %vm1468_vm0, %v1467_v1  ;;  %1252 = vmatprep.mubr.msk.f32.mxu1 %vm1468_vm0, %v1467_v1 }
  0x63   :  { %1230 = vmatmul.mubr.msk.f32.gmra.mrb[8].mxu0 %vm265_vm2, %v158_v6  ;;  %1253 = vmatmul.mubr.msk.f32.gmra.mrb[8].mxu1 %vm265_vm2, %v48_v7 }
  0x64   :  { %1232 = vmatprep.mubr.msk.f32.mxu0 %vm1468_vm0, %v1467_v1  ;;  %1255 = vmatprep.mubr.msk.f32.mxu1 %vm1468_vm0, %v1467_v1 }
  0x67   :  { %1233 = vmatmul.mubr.msk.f32.gmra.mrb[10].mxu0 %vm265_vm2, %v159_v8  ;;  %1256 = vmatmul.mubr.msk.f32.gmra.mrb[10].mxu1 %vm265_vm2, %v49_v9 }
  0x68   :  { %1235 = vmatprep.mubr.msk.f32.mxu0 %vm1468_vm0, %v1467_v1  ;;  %1258 = vmatprep.mubr.msk.f32.mxu1 %vm1468_vm0, %v1467_v1 }
  0x6b   :  { %1236 = vmatmul.mubr.msk.f32.gmra.mrb[12].mxu0 %vm265_vm2, %v160_v10  ;;  %1259 = vmatmul.mubr.msk.f32.gmra.mrb[12].mxu1 %vm265_vm2, %v50_v11 }
  0x6c   :  { %1265 = vmatprep.mubr.msk.f32.mxu0 %vm1468_vm0, %v1467_v1  ;;  %1300 = vmatprep.mubr.msk.f32.mxu1 %vm1468_vm0, %v1467_v1 }
  0x6f   :  { %1266 = vmatmul.mubr.msk.f32.vlgmr.msra.gmra.mrb[14].mxu0 %vm515_vm3, %v508_v12 }
  0x70   :  { %1268 = vmatprep.mubr.msk.f32.mxu0 %vm1468_vm0, %v1467_v1 }
  0x73   :  { %1269 = vmatmul.mubr.msk.f32.gmra.mrb[16].mxu0 %vm515_vm3, %v509_v13 }
  0x74   :  { %1271 = vmatprep.mubr.msk.f32.mxu0 %vm1468_vm0, %v1467_v1 }
  0x77   :  { %1272 = vmatmul.mubr.msk.f32.gmra.mrb[18].mxu0 %vm515_vm3, %v510_v14 }
  0x78   :  { %1274 = vmatprep.mubr.msk.f32.mxu0 %vm1468_vm0, %v1467_v1 }
  0x7b   :  { %1275 = vmatmul.mubr.msk.f32.gmra.mrb[20].mxu0 %vm515_vm3, %v511_v15 }
  0x7c   :  { %1277 = vmatprep.mubr.msk.f32.mxu0 %vm1468_vm0, %v1467_v1 }
  0x7f   :  { %1278 = vmatmul.mubr.msk.f32.gmra.mrb[22].mxu0 %vm515_vm3, %v512_v16 }
  0x80   :  { %1280 = vmatprep.mubr.msk.f32.mxu0 %vm1468_vm0, %v1467_v1 }
  0x83   :  { %1281 = vmatmul.mubr.msk.f32.gmra.mrb[24].mxu0 %vm515_vm3, %v513_v17  ;;  %v654_v54 = vpop.permute.xlu0 %653  ;;  %v664_v2 = vpop.permute.xlu1 %663 }
  0x84   :  { %1283 = vmatprep.mubr.msk.f32.mxu0 %vm1468_vm0, %v1467_v1 }
  0x87   :  { %1284 = vmatmul.mubr.msk.f32.gmra.mrb[26].mxu0 %vm515_vm3, %v514_v18  ;;  %v659_v61 = vpop.permute.xlu0 %658  ;;  %v669_v11 = vpop.permute.xlu1 %668 }
  0x93   :  { %v674_v18 = vpop.permute.xlu0 %673 }
 0x126   :  { %v353_v19 = vpop.f32.mrb[0].mxu0  ;;  %v474_v20 = vpop.f32.mrb[0].mxu1 }
 0x127   :  { %v475_v21 = vadd.f32 %v474_v20, %v353_v19  ;;  %v1219_v22 = vpop.f32.mrb[1].mxu0  ;;  %v1242_v23 = vpop.f32.mrb[1].mxu1 }
 0x12a   :  { %v358_v24 = vpop.f32.mrb[2].mxu0  ;;  %v479_v25 = vpop.f32.mrb[2].mxu1 }
 0x12b   :  { %v480_v26 = vadd.f32 %v479_v25, %v358_v24  ;;  %v1222_v27 = vpop.f32.mrb[3].mxu0  ;;  %v1245_v28 = vpop.f32.mrb[3].mxu1 }
 0x12c   :  { %v679_v24 = vpop.permute.xlu1 %678 }
 0x12e   :  { %v363_v29 = vpop.f32.mrb[4].mxu0  ;;  %v484_v30 = vpop.f32.mrb[4].mxu1 }
 0x12f   :  { %v485_v31 = vadd.f32 %v484_v30, %v363_v29  ;;  %v1225_v32 = vpop.f32.mrb[5].mxu0  ;;  %v1248_v33 = vpop.f32.mrb[5].mxu1 }
 0x130   :  { %v684_v30 = vpop.permute.xlu0 %683 }
 0x132   :  { %v368_v34 = vpop.f32.mrb[6].mxu0  ;;  %v489_v35 = vpop.f32.mrb[6].mxu1 }
 0x133   :  { %v490_v36 = vadd.f32 %v489_v35, %v368_v34  ;;  %v1228_v37 = vpop.f32.mrb[7].mxu0  ;;  %v1251_v38 = vpop.f32.mrb[7].mxu1 }
 0x134   :  { %v700_v37 = vld [vmem:[%s1856_s5] sm:$0xff] }
 0x136   :  { %v373_v39 = vpop.f32.mrb[8].mxu0  ;;  %v494_v40 = vpop.f32.mrb[8].mxu1 }
 0x137   :  { %v495_v41 = vadd.f32 %v494_v40, %v373_v39  ;;  %v1231_v42 = vpop.f32.mrb[9].mxu0  ;;  %v1254_v43 = vpop.f32.mrb[9].mxu1  ;;  %v701_v39 = vld [vmem:[%s1856_s5 + $0x8] sm:$0xff]  ;;  %v702_v40 = vld [vmem:[%s1856_s5 + $0x10] sm:$0xff] }
 0x138   :  { %v704_v42 = vld [vmem:[%s1856_s5 + $0x20] sm:$0xff]  ;;  %v705_v43 = vld [vmem:[%s1856_s5 + $0x28] sm:$0xff] }
 0x13a   :  { %v378_v44 = vpop.f32.mrb[10].mxu0  ;;  %v499_v45 = vpop.f32.mrb[10].mxu1 }
 0x13b   :  { %v500_v46 = vadd.f32 %v499_v45, %v378_v44  ;;  %v1234_v47 = vpop.f32.mrb[11].mxu0  ;;  %v1257_v48 = vpop.f32.mrb[11].mxu1  ;;  %v706_v44 = vld [vmem:[%s1856_s5 + $0x30] sm:$0x3]  ;;  %v882_v45 = vld [vmem:[%s1858_s7] sm:$0xff] }
 0x13c   :  { %1335 = vmatprep.mubr.msk.f32.mxu0 %vm749_vm5, %v882_v45  ;;  %v717_v47 = vpop.permute.xlu1 %716 }
 0x13e   :  { %v383_v4 = vpop.f32.mrb[12].mxu0  ;;  %v504_v49 = vpop.f32.mrb[12].mxu1 }
 0x13f   :  { %v505_v50 = vadd.f32 %v504_v49, %v383_v4  ;;  %v1237_v51 = vpop.f32.mrb[13].mxu0  ;;  %v1260_v53 = vpop.f32.mrb[13].mxu1 }
 0x140   :  { %v722_v49 = vpop.permute.xlu0 %721 }
 0x142   :  { %v603_v55 = vpop.f32.mrb[14].mxu0 }
 0x143   :  { %v637_v56 = vadd.f32 %v603_v55, %v475_v21  ;;  %v1267_v0 = vpop.f32.mrb[15].mxu0  ;;  %v727_v55 = vpop.permute.xlu1 %726 }
 0x144   :  { %v732_v0 = vpop.permute.xlu0 %731 }
 0x145   :  { %v686_v57 = vadd.f32 %v654_v54, %v637_v56 }
 0x146   :  { %v608_v58 = vpop.f32.mrb[16].mxu0 }
 0x147   :  { %v638_v59 = vadd.f32 %v608_v58, %v480_v26  ;;  %v1270_v60 = vpop.f32.mrb[17].mxu0  ;;  %1407 = vtanh.f32 %v686_v57 }
 0x149   :  { %v687_v63 = vadd.f32 %v659_v61, %v638_v59 }
 0x14a   :  { %v613_v3 = vpop.f32.mrb[18].mxu0 }
 0x14b   :  { %1409 = vtanh.f32 %v687_v63  ;;  %v639_v5 = vadd.f32 %v613_v3, %v485_v31  ;;  %v1273_v6 = vpop.f32.mrb[19].mxu0 }
 0x14d   :  { %v688_v7 = vadd.f32 %v664_v2, %v639_v5  ;;  %v737_v2 = vpop.permute.xlu1 %736 }
 0x14e   :  { %v618_v8 = vpop.f32.mrb[20].mxu0 }
 0x14f   :  { %v640_v9 = vadd.f32 %v618_v8, %v490_v36  ;;  %v1276_v10 = vpop.f32.mrb[21].mxu0  ;;  %1411 = vtanh.f32 %v688_v7  ;;  %v742_v7 = vpop.permute.xlu0 %741 }
 0x151   :  { %v689_v12 = vadd.f32 %v669_v11, %v640_v9  ;;  %v1408_v16 = vpop.eup %1407 }
 0x152   :  { %v623_v13 = vpop.f32.mrb[22].mxu0 }
 0x153   :  { %1413 = vtanh.f32 %v689_v12  ;;  %v641_v14 = vadd.f32 %v623_v13, %v495_v41  ;;  %v1279_v15 = vpop.f32.mrb[23].mxu0  ;;  %v703_v41 = vld [vmem:[%s1856_s5 + $0x18] sm:$0xff]  ;;  %v747_v12 = vpop.permute.xlu1 %746 }
 0x155   :  { %v1410_v17 = vpop.eup %1409  ;;  %v690_v19 = vadd.f32 %v674_v18, %v641_v14 }
 0x156   :  { %v628_v20 = vpop.f32.mrb[24].mxu0  ;;  %v1356_v21 = vpack.c.bf16 %v1410_v17, %v1408_v16 }
 0x157   :  { %v642_v22 = vadd.f32 %v628_v20, %v500_v46  ;;  %v1282_v23 = vpop.f32.mrb[25].mxu0  ;;  %1415 = vtanh.f32 %v690_v19 }
 0x158   :  { %1357 = vmatpush3.bf16.msra.mxu1 %v1356_v21  ;;  %v884_v23 = vld [vmem:[%s1858_s7 + $0x10] sm:$0xff] }
 0x159   :  { %v691_v25 = vadd.f32 %v679_v24, %v642_v22  ;;  %1358 = vmatprep.subr.bf16.mxu1 %v1476_v62  ;;  %v1412_v29 = vpop.eup %1411  ;;  %v883_v22 = vld [vmem:[%s1858_s7 + $0x8] sm:$0xff]  ;;  %v885_v24 = vld [vmem:[%s1858_s7 + $0x18] sm:$0x1] }
 0x15a   :  { %v633_v26 = vpop.f32.mrb[26].mxu0 }
 0x15b   :  { %1417 = vtanh.f32 %v691_v25  ;;  %v643_v27 = vadd.f32 %v633_v26, %v505_v50  ;;  %v1285_v28 = vpop.f32.mrb[27].mxu0  ;;  %v898_v25 = vpop.permute.xlu1 %897 }
 0x15c   :  { %v893_v26 = vpop.permute.xlu0 %892 }
 0x15d   :  { %v1414_v31 = vpop.eup %1413  ;;  %v692_v32 = vadd.f32 %v684_v30, %v643_v27 }
 0x15e   :  { %v1359_v33 = vpack.c.bf16 %v1414_v31, %v1412_v29 }
 0x15f   :  { %1419 = vtanh.f32 %v692_v32  ;;  %v908_v31 = vpop.permute.xlu1 %907 }
 0x160   :  { %1360 = vmatpush3.bf16.msra.mxu1 %v1359_v33  ;;  %v903_v33 = vpop.permute.xlu0 %902 }
 0x161   :  { %1361 = vmatprep.subr.bf16.mxu1 %v1476_v62  ;;  %v1416_v34 = vpop.eup %1415 }
 0x164   :  { %v1019_v45 = vpop.permute.xlu0 %1018 }
 0x165   :  { %v1418_v35 = vpop.eup %1417 }
 0x166   :  { %v1362_v36 = vpack.c.bf16 %v1418_v35, %v1416_v34 }
 0x168   :  { %1363 = vmatpush3.bf16.msra.mxu1 %v1362_v36 }
 0x169   :  { %1298 = vmatprep.subr.mxu1 %v1467_v1  ;;  %v1420_v38 = vpop.eup %1419 }
 0x16c   :  { %1299 = vmatpush3.msk.msra.mxu1 %vm771_vm4, %v1420_v38 }
 0x16d   :  { %1301 = vmatmul.mubr.msk.f32.vlgmr.msra.gmra.mrb[14].mxu1 %vm749_vm5, %v700_v37  ;;  %1376 = vmatprep.subr.bf16.mxu1 %v1476_v62 }
 0x16e   :  { %1303 = vmatprep.mubr.msk.f32.mxu1 %vm1468_vm0, %v1467_v1 }
 0x171   :  { %1304 = vmatmul.mubr.msk.f32.gmra.mrb[16].mxu1 %vm749_vm5, %v701_v39 }
 0x172   :  { %1306 = vmatprep.mubr.msk.f32.mxu1 %vm1468_vm0, %v1467_v1 }
 0x175   :  { %1307 = vmatmul.mubr.msk.f32.gmra.mrb[18].mxu1 %vm749_vm5, %v702_v40 }
 0x176   :  { %1309 = vmatprep.mubr.msk.f32.mxu1 %vm1468_vm0, %v1467_v1 }
 0x179   :  { %1310 = vmatmul.mubr.msk.f32.gmra.mrb[20].mxu1 %vm749_vm5, %v703_v41 }
 0x17a   :  { %1312 = vmatprep.mubr.msk.f32.mxu1 %vm1468_vm0, %v1467_v1 }
 0x17d   :  { %1313 = vmatmul.mubr.msk.f32.gmra.mrb[22].mxu1 %vm749_vm5, %v704_v42 }
 0x17e   :  { %1315 = vmatprep.mubr.msk.f32.mxu1 %vm1468_vm0, %v1467_v1 }
 0x181   :  { %1316 = vmatmul.mubr.msk.f32.gmra.mrb[24].mxu1 %vm749_vm5, %v705_v43  ;;  %v1014_v43 = vld [vmem:[%s1860_s9] sm:$0xff] }
 0x182   :  { %1318 = vmatprep.mubr.msk.f32.mxu1 %vm1468_vm0, %v1467_v1 }
 0x185   :  { %1319 = vmatmul.mubr.msk.f32.gmra.mrb[26].mxu1 %vm749_vm5, %v706_v44  ;;  %v42_v44 = vmul.f32 0.1, %v1637_v52 }
 0x186   :  { %1349 = vmatprep.mubr.msk.f32.mxu1 %vm1468_vm0, %v1467_v1  ;;  %vm1025_vm0 = vcmask 1040384  }
 0x187   :  { %vm1381_vm7 = vmpackc.low %vm1025_vm0, %vm1477_vm6  ;;  %43 = vst [vmem:[#allocation2] sm:$0xff] %v42_v44 }
 0x240   :  { %v841_v46 = vpop.f32.mrb[14].mxu1 }
 0x241   :  { %v1302_v48 = vpop.f32.mrb[15].mxu1  ;;  %v842_v4 = vadd.f32 %v841_v46, %v717_v47 }
 0x243   :  { %1421 = vtanh.f32 %v842_v4 }
 0x244   :  { %v846_v50 = vpop.f32.mrb[16].mxu1 }
 0x245   :  { %v847_v51 = vadd.f32 %v846_v50, %v722_v49  ;;  %v1305_v53 = vpop.f32.mrb[17].mxu1 }
 0x247   :  { %1423 = vtanh.f32 %v847_v51 }
 0x248   :  { %v851_v54 = vpop.f32.mrb[18].mxu1 }
 0x249   :  { %v1308_v56 = vpop.f32.mrb[19].mxu1  ;;  %v852_v1 = vadd.f32 %v851_v54, %v727_v55 }
 0x24b   :  { %1425 = vtanh.f32 %v852_v1 }
 0x24c   :  { %v856_v57 = vpop.f32.mrb[20].mxu1 }
 0x24d   :  { %v857_v58 = vadd.f32 %v856_v57, %v732_v0  ;;  %v1311_v59 = vpop.f32.mrb[21].mxu1  ;;  %v1422_v60 = vpop.eup %1421 }
 0x24f   :  { %1427 = vtanh.f32 %v857_v58 }
 0x250   :  { %v861_v61 = vpop.f32.mrb[22].mxu1 }
 0x251   :  { %v1424_v63 = vpop.eup %1423  ;;  %v1314_v3 = vpop.f32.mrb[23].mxu1  ;;  %v862_v5 = vadd.f32 %v861_v61, %v737_v2 }
 0x252   :  { %v1364_v6 = vpack.c.bf16 %v1424_v63, %v1422_v60 }
 0x253   :  { %1429 = vtanh.f32 %v862_v5 }
 0x254   :  { %v866_v8 = vpop.f32.mrb[24].mxu1  ;;  %1365 = vmatprep.subr.bf16.mxu0 %v1364_v6 }
 0x255   :  { %v867_v9 = vadd.f32 %v866_v8, %v742_v7  ;;  %v1317_v10 = vpop.f32.mrb[25].mxu1  ;;  %1367 = vmatpush3.bf16.msra.mxu0 %v1364_v6  ;;  %v1426_v11 = vpop.eup %1425 }
 0x257   :  { %1431 = vtanh.f32 %v867_v9 }
 0x258   :  { %v871_v13 = vpop.f32.mrb[26].mxu1 }
 0x259   :  { %v1428_v14 = vpop.eup %1427  ;;  %v872_v15 = vadd.f32 %v871_v13, %v747_v12  ;;  %v1320_v16 = vpop.f32.mrb[27].mxu1 }
 0x25a   :  { %v1368_v17 = vpack.c.bf16 %v1428_v14, %v1426_v11 }
 0x25b   :  { %1433 = vtanh.f32 %v872_v15 }
 0x25c   :  { %1369 = vmatprep.subr.bf16.mxu0 %v1368_v17 }
 0x25d   :  { %1371 = vmatpush3.bf16.msra.mxu0 %v1368_v17  ;;  %v1430_v18 = vpop.eup %1429 }
 0x261   :  { %v1432_v19 = vpop.eup %1431 }
 0x262   :  { %v1372_v20 = vpack.c.bf16 %v1432_v19, %v1430_v18 }
 0x264   :  { %1373 = vmatprep.subr.bf16.mxu0 %v1372_v20 }
 0x265   :  { %v1434_v21 = vpop.eup %1433  ;;  %1375 = vmatpush3.bf16.msra.mxu0 %v1372_v20 }
 0x266   :  { %1333 = vmatprep.subr.msk.mxu0 %vm771_vm4, %v1434_v21 }
 0x269   :  { %1334 = vmatpush3.msk.msra.mxu0 %vm771_vm4, %v1434_v21 }
 0x26a   :  { %1336 = vmatmul.mubr.msk.f32.vlgmr.msra.gmra.mrb[28].mxu0 %vm749_vm5, %v883_v22 }
 0x26b   :  { %1338 = vmatprep.mubr.msk.f32.mxu0 %vm749_vm5, %v884_v23 }
 0x26e   :  { %1339 = vmatmul.mubr.msk.f32.gmra.mrb[30].mxu0 %vm749_vm5, %v885_v24 }
 0x33d   :  { %v1337_v27 = vpop.f32.mrb[28].mxu0 }
 0x33e   :  { %v997_v28 = vadd.f32 %v1337_v27, %v898_v25  ;;  %v991_v29 = vpop.f32.mrb[29].mxu0 }
 0x33f   :  { %v992_v30 = vadd.f32 %v991_v29, %v893_v26 }
 0x340   :  { %1435 = vtanh.f32 %v997_v28 }
 0x341   :  { %1437 = vtanh.f32 %v992_v30  ;;  %v1340_v32 = vpop.f32.mrb[30].mxu0 }
 0x342   :  { %v1007_v34 = vadd.f32 %v1340_v32, %v908_v31  ;;  %v1001_v35 = vpop.f32.mrb[31].mxu0 }
 0x343   :  { %v1002_v36 = vadd.f32 %v1001_v35, %v903_v33 }
 0x344   :  { %1439 = vtanh.f32 %v1007_v34 }
 0x345   :  { %1441 = vtanh.f32 %v1002_v36 }
 0x34a   :  { %v1436_v37 = vpop.eup %1435 }
 0x34b   :  { %v1438_v38 = vpop.eup %1437 }
 0x34c   :  { %v1377_v39 = vpack.c.bf16 %v1436_v37, %v1438_v38 }
 0x34e   :  { %v1440_v40 = vpop.eup %1439  ;;  %1378 = vmatpush3.bf16.msra.mxu1 %v1377_v39 }
 0x34f   :  { %v1442_v41 = vpop.eup %1441  ;;  %1379 = vmatprep.subr.bf16.mxu1 %v1476_v62 }
 0x350   :  { %v1380_v42 = vpack.c.bf16 %v1440_v40, %v1442_v41 }
 0x352   :  { %1382 = vmatpush3.bf16.msk.msra.mxu1 %vm1381_vm7, %v1380_v42 }
 0x355   :  { %1350 = vmatmul.mubr.msk.f32.vlgmr.msra.gmra.mrb[28].mxu1 %vm1021_vm8, %v1014_v43 }
 0x428   :  { %v1095_v46 = vpop.f32.mrb[28].mxu1 }
 0x429   :  { %v1096_v47 = vadd.f32 %v1095_v46, %v1019_v45  ;;  %v1351_v62 = vpop.f32.mrb[29].mxu1 }
 0x42b   :  { %1099 = vst [vmem:[#allocation2 + $0x8] sm:$0xff] %v1096_v47 }
 0x42c   :  { %1454 = shalt.err (!%p1451_p4)
}
 0x42d   :  { %s1455_s13 = scalar_lea.hbm %s1862_s11, 256 }
 0x42e   :  { %p1456_p5 = scmp.ne.s32.totalorder %s1862_s11, %s1455_s13  ;;  %p1459_p6 = scmp.lt.u32.totalorder %s1455_s13, %s1862_s11 }
 0x430   :  { %p1461_p7 = pnand %p1459_p6, %p1456_p5 }
 0x432   :  { %1464 = shalt.err (!%p1461_p7)
}
 0x433   :  { %s1479_s16 = smov 128   ;;  %s1480_s8 = smov 8  }
 0x434   :  { %1111 = dma.vmem_to_hbm [thread:$0]  %s1106_s29, 256, %s1862_s11, [#allocation3], %s1479_s16, %s1479_s16, %s1480_s8  }
 0x435   :  { %1465 = dma.done.wait [#allocation3], 256  }
 0x436   :  { %1466 = vsyncadd [#allocation3], 4294967040 }
 0x437   :  { %1115 = vsyncpa [#allocation3], 1 }

</bundles_post_ra>
